<compile_context>
chip_gen: v7x
topology: tpu7x:2x2x1
jax: 0.10.0
libtpu: 0.0.40
codegen_flags: <defaults>
</compile_context>

<pallas_src>
import jax
import jax.numpy as jnp
from jax.experimental import pallas as pl
from jax.experimental.pallas import tpu as pltpu

LANE = 128   # vreg lane width
SUBLANE = 8  # vreg sublane count


def _round_up(n, m):
    return ((n + m - 1) // m) * m


def hope_mlp_kernel(x_ref, w1_ref, b1_ref, w2_ref, b2_ref, w3_ref, b3_ref, o_ref):
    # One batch tile. Weights are bf16 (resident across grid steps); all
    # matmuls accumulate in f32 on the MXU; elementwise math stays f32.
    x = x_ref[...].astype(jnp.bfloat16)

    # Layer 1: Linear + LeakyReLU(0.1)
    h = jnp.dot(x, w1_ref[...], preferred_element_type=jnp.float32) + b1_ref[...]
    h = jnp.where(h >= 0.0, h, 0.1 * h)

    # Layer 2: Linear + LeakyReLU(0.1)
    h = jnp.dot(h.astype(jnp.bfloat16), w2_ref[...],
                preferred_element_type=jnp.float32) + b2_ref[...]
    h = jnp.where(h >= 0.0, h, 0.1 * h)

    # Layer 3: Linear + Tanh (output written at its true width; Pallas masks
    # the partial last batch tile).
    h = jnp.dot(h.astype(jnp.bfloat16), w3_ref[...],
                preferred_element_type=jnp.float32) + b3_ref[...]
    o_ref[...] = jnp.tanh(h).astype(o_ref.dtype)


def prepare_padded_params(params):
    """One-time prep (outside the hot path): transpose PyTorch-convention
    (out, in) weights to (in, out), zero-pad only the hidden dim to a 128-lane
    multiple, and cast weights to bf16. Biases stay f32 (added in f32)."""
    w1, b1 = params["w1"], params["b1"]  # (hidden, input), (hidden,)
    w2, b2 = params["w2"], params["b2"]  # (hidden, hidden), (hidden,)
    w3, b3 = params["w3"], params["b3"]  # (output, hidden), (output,)

    hid = w1.shape[0]
    hid_p = _round_up(hid, LANE)
    dh = hid_p - hid

    return {
        # (in, hid_p): contraction dim left at the true input size.
        "w1t": jnp.pad(w1.T, ((0, 0), (0, dh))).astype(jnp.bfloat16),
        "b1": jnp.pad(b1, (0, dh))[None, :].astype(jnp.float32),
        # (hid_p, hid_p)
        "w2t": jnp.pad(w2.T, ((0, dh), (0, dh))).astype(jnp.bfloat16),
        "b2": jnp.pad(b2, (0, dh))[None, :].astype(jnp.float32),
        # (hid_p, out): output dim left at its true size (unpadded writeback).
        "w3t": jnp.pad(w3.T, ((0, dh), (0, 0))).astype(jnp.bfloat16),
        "b3": b3[None, :].astype(jnp.float32),
    }


def _choose_tm(batch):
    """Batch tile: multiple of 8 rows, cap 512; >= 2 grid steps when B > 8 so
    the 'parallel' batch axis can shard across both v7x TensorCores."""
    cap = 512
    if batch <= SUBLANE:
        return batch  # single tile, block dim equals full array dim
    return min(cap, _round_up(pl.cdiv(batch, 2), SUBLANE))


def hope_nn_forward(x, padded):
    """x: (B, input_size) float32.  padded: output of prepare_padded_params."""
    B, in_size = x.shape
    hid_p = padded["w1t"].shape[1]
    out_size = padded["w3t"].shape[1]

    tm = _choose_tm(B)
    grid = (pl.cdiv(B, tm),)

    const = lambda i: (0, 0)  # weights/biases stay resident across grid steps

    # Advisory cost estimate (helps XLA schedule neighbors around the call).
    flops = 2 * B * (in_size * hid_p + hid_p * hid_p + hid_p * out_size)
    weight_bytes = sum(int(padded[k].size) * padded[k].dtype.itemsize
                       for k in padded)
    bytes_accessed = B * (in_size + out_size) * 4 + weight_bytes

    # VMEM budget: double-buffered weights/biases + double-buffered x/out
    # tiles + rough f32 intermediates.  Raise the scoped limit only if the
    # 32 MiB default would be exceeded (v7x guard when hidden_size grows).
    act_bytes = 2 * tm * (in_size + out_size) * 4
    scratch_bytes = 4 * tm * hid_p * 4
    vmem_needed = 2 * weight_bytes + act_bytes + scratch_bytes
    cp_kwargs = dict(dimension_semantics=("parallel",))
    if vmem_needed > 32 * 1024 * 1024:
        cp_kwargs["vmem_limit_bytes"] = min(int(1.25 * vmem_needed),
                                            64 * 1024 * 1024)

    return pl.pallas_call(
        hope_mlp_kernel,
        out_shape=jax.ShapeDtypeStruct((B, out_size), jnp.float32),
        grid=grid,
        in_specs=[
            pl.BlockSpec((tm, in_size), lambda i: (i, 0)),   # x: streamed tiles
            pl.BlockSpec((in_size, hid_p), const),           # w1t (bf16)
            pl.BlockSpec((1, hid_p), const),                 # b1
            pl.BlockSpec((hid_p, hid_p), const),             # w2t (bf16)
            pl.BlockSpec((1, hid_p), const),                 # b2
            pl.BlockSpec((hid_p, out_size), const),          # w3t (bf16)
            pl.BlockSpec((1, out_size), const),              # b3
        ],
        out_specs=pl.BlockSpec((tm, out_size), lambda i: (i, 0)),
        compiler_params=pltpu.CompilerParams(**cp_kwargs),
        cost_estimate=pl.CostEstimate(
            flops=flops,
            transcendentals=B * out_size,
            bytes_accessed=bytes_accessed,
        ),
    )(x, padded["w1t"], padded["b1"], padded["w2t"], padded["b2"],
      padded["w3t"], padded["b3"])


def init_params(key, input_size, hidden_size, output_size):
    """Deterministic init mimicking nn.Linear's uniform(-1/sqrt(fan_in), ...)."""
    ks = jax.random.split(key, 6)

    def linear_init(kw, kb, fan_in, fan_out):
        bound = 1.0 / jnp.sqrt(fan_in)
        w = jax.random.uniform(kw, (fan_out, fan_in), jnp.float32, -bound, bound)
        b = jax.random.uniform(kb, (fan_out,), jnp.float32, -bound, bound)
        return w, b

    w1, b1 = linear_init(ks[0], ks[1], input_size, hidden_size)
    w2, b2 = linear_init(ks[2], ks[3], hidden_size, hidden_size)
    w3, b3 = linear_init(ks[4], ks[5], hidden_size, output_size)
    return {"w1": w1, "b1": b1, "w2": w2, "b2": b2, "w3": w3, "b3": b3}


def reference_forward(x, params):
    """Pure-JAX f32 reference matching the PyTorch forward."""
    h = x @ params["w1"].T + params["b1"]
    h = jnp.where(h >= 0.0, h, 0.1 * h)
    h = h @ params["w2"].T + params["b2"]
    h = jnp.where(h >= 0.0, h, 0.1 * h)
    h = h @ params["w3"].T + params["b3"]
    return jnp.tanh(h)


if __name__ == "__main__":
    input_size, hidden_size, output_size = 32, 64, 16
    batch = 8

    key = jax.random.PRNGKey(0)
    k_x, k_p = jax.random.split(key)
    x = jax.random.normal(k_x, (batch, input_size), jnp.float32)
    params = init_params(k_p, input_size, hidden_size, output_size)

    # One-time (outside hot path): transpose + pad hidden dim + cast to bf16.
    padded = prepare_padded_params(params)

    out = hope_nn_forward(x, padded)
    out = jax.block_until_ready(out)

    ref = reference_forward(x, params)
    assert out.shape == (batch, output_size)
    # bf16 matmul operands (f32 accumulation): slightly looser tolerance.
    assert jnp.allclose(out, ref, atol=2e-2, rtol=2e-2), "mismatch vs reference"

    print("KERNEL_OK")
</pallas_src>

<mosaic_0001>
module attributes {stable_mosaic.version = 11 : i64} {
  func.func @hope_mlp_kernel(%arg0: i32, %arg1: memref<8x32xf32, #tpu.memory_space<vmem>>, %arg2: memref<32x128xbf16, #tpu.memory_space<vmem>>, %arg3: memref<1x128xf32, #tpu.memory_space<vmem>>, %arg4: memref<128x128xbf16, #tpu.memory_space<vmem>>, %arg5: memref<1x128xf32, #tpu.memory_space<vmem>>, %arg6: memref<128x16xbf16, #tpu.memory_space<vmem>>, %arg7: memref<1x16xf32, #tpu.memory_space<vmem>>, %arg8: memref<8x16xf32, #tpu.memory_space<vmem>>) attributes {dimension_semantics = [#tpu.dimension_semantics<parallel>], iteration_bounds = array<i64: 1>, scalar_prefetch = 0 : i64, scratch_operands = 0 : i64, tpu.core_type = #tpu.core_type<tc>, window_params = [{transform_indices = @transform_0, window_bounds = array<i64: 8, 32>}, {pipeline_mode = #tpu.pipeline_mode<synchronous>, transform_indices = @transform_1, window_bounds = array<i64: 32, 128>}, {pipeline_mode = #tpu.pipeline_mode<synchronous>, transform_indices = @transform_2, window_bounds = array<i64: 1, 128>}, {pipeline_mode = #tpu.pipeline_mode<synchronous>, transform_indices = @transform_3, window_bounds = array<i64: 128, 128>}, {pipeline_mode = #tpu.pipeline_mode<synchronous>, transform_indices = @transform_4, window_bounds = array<i64: 1, 128>}, {pipeline_mode = #tpu.pipeline_mode<synchronous>, transform_indices = @transform_5, window_bounds = array<i64: 128, 16>}, {pipeline_mode = #tpu.pipeline_mode<synchronous>, transform_indices = @transform_6, window_bounds = array<i64: 1, 16>}, {transform_indices = @transform_7, window_bounds = array<i64: 8, 16>}]} {
    %c0 = arith.constant 0 : index
    %c0_0 = arith.constant 0 : index
    %0 = vector.load %arg1[%c0, %c0_0] : memref<8x32xf32, #tpu.memory_space<vmem>>, vector<8x32xf32>
    %1 = arith.truncf %0 : vector<8x32xf32> to vector<8x32xbf16>
    %c0_1 = arith.constant 0 : index
    %c0_2 = arith.constant 0 : index
    %2 = vector.load %arg2[%c0_1, %c0_2] : memref<32x128xbf16, #tpu.memory_space<vmem>>, vector<32x128xbf16>
    %cst = arith.constant dense<0.000000e+00> : vector<8x128xf32>
    %3 = tpu.matmul %1, %2, %cst {dimension_numbers = #tpu.dot_dimension_numbers<[1], [0], [0], [1], [0, 0, 1, 1], [], []>} : vector<8x32xbf16>, vector<32x128xbf16>, vector<8x128xf32> -> vector<8x128xf32>
    %c0_3 = arith.constant 0 : index
    %c0_4 = arith.constant 0 : index
    %4 = vector.load %arg3[%c0_3, %c0_4] : memref<1x128xf32, #tpu.memory_space<vmem>>, vector<1x128xf32>
    %5 = vector.broadcast %4 : vector<1x128xf32> to vector<8x128xf32>
    %6 = arith.addf %3, %5 : vector<8x128xf32>
    %cst_5 = arith.constant 0.000000e+00 : f32
    %7 = vector.broadcast %cst_5 : f32 to vector<8x128xf32>
    %8 = arith.cmpf oge, %6, %7 : vector<8x128xf32>
    %cst_6 = arith.constant 1.000000e-01 : f32
    %9 = vector.broadcast %cst_6 : f32 to vector<8x128xf32>
    %10 = arith.mulf %9, %6 : vector<8x128xf32>
    %11 = arith.select %8, %6, %10 : vector<8x128xi1>, vector<8x128xf32>
    %12 = arith.truncf %11 : vector<8x128xf32> to vector<8x128xbf16>
    %c0_7 = arith.constant 0 : index
    %c0_8 = arith.constant 0 : index
    %13 = vector.load %arg4[%c0_7, %c0_8] : memref<128x128xbf16, #tpu.memory_space<vmem>>, vector<128x128xbf16>
    %cst_9 = arith.constant dense<0.000000e+00> : vector<8x128xf32>
    %14 = tpu.matmul %12, %13, %cst_9 {dimension_numbers = #tpu.dot_dimension_numbers<[1], [0], [0], [1], [0, 0, 1, 1], [], []>} : vector<8x128xbf16>, vector<128x128xbf16>, vector<8x128xf32> -> vector<8x128xf32>
    %c0_10 = arith.constant 0 : index
    %c0_11 = arith.constant 0 : index
    %15 = vector.load %arg5[%c0_10, %c0_11] : memref<1x128xf32, #tpu.memory_space<vmem>>, vector<1x128xf32>
    %16 = vector.broadcast %15 : vector<1x128xf32> to vector<8x128xf32>
    %17 = arith.addf %14, %16 : vector<8x128xf32>
    %cst_12 = arith.constant 0.000000e+00 : f32
    %18 = vector.broadcast %cst_12 : f32 to vector<8x128xf32>
    %19 = arith.cmpf oge, %17, %18 : vector<8x128xf32>
    %cst_13 = arith.constant 1.000000e-01 : f32
    %20 = vector.broadcast %cst_13 : f32 to vector<8x128xf32>
    %21 = arith.mulf %20, %17 : vector<8x128xf32>
    %22 = arith.select %19, %17, %21 : vector<8x128xi1>, vector<8x128xf32>
    %23 = arith.truncf %22 : vector<8x128xf32> to vector<8x128xbf16>
    %c0_14 = arith.constant 0 : index
    %c0_15 = arith.constant 0 : index
    %24 = vector.load %arg6[%c0_14, %c0_15] : memref<128x16xbf16, #tpu.memory_space<vmem>>, vector<128x16xbf16>
    %cst_16 = arith.constant dense<0.000000e+00> : vector<8x16xf32>
    %25 = tpu.matmul %23, %24, %cst_16 {dimension_numbers = #tpu.dot_dimension_numbers<[1], [0], [0], [1], [0, 0, 1, 1], [], []>} : vector<8x128xbf16>, vector<128x16xbf16>, vector<8x16xf32> -> vector<8x16xf32>
    %c0_17 = arith.constant 0 : index
    %c0_18 = arith.constant 0 : index
    %26 = vector.load %arg7[%c0_17, %c0_18] : memref<1x16xf32, #tpu.memory_space<vmem>>, vector<1x16xf32>
    %27 = vector.broadcast %26 : vector<1x16xf32> to vector<8x16xf32>
    %28 = arith.addf %25, %27 : vector<8x16xf32>
    %29 = math.tanh %28 : vector<8x16xf32>
    %c0_19 = arith.constant 0 : index
    %c0_20 = arith.constant 0 : index
    %30 = vector.load %arg8[%c0_19, %c0_20] : memref<8x16xf32, #tpu.memory_space<vmem>>, vector<8x16xf32>
    tpu.vector_store %arg8[%c0_19, %c0_20], %29 {strides = array<i32>} : memref<8x16xf32, #tpu.memory_space<vmem>>, vector<8x16xf32>,
    return
  }
  func.func @transform_0(%arg0: i32) -> (i32, i32) {
    %c0_i32 = arith.constant 0 : i32
    %c0_i32_0 = arith.constant 0 : i32
    return %arg0, %c0_i32 : i32, i32
  }
  func.func @transform_1(%arg0: i32) -> (i32, i32) {
    %c0_i32 = arith.constant 0 : i32
    %c0_i32_0 = arith.constant 0 : i32
    %c0_i32_1 = arith.constant 0 : i32
    return %c0_i32, %c0_i32_0 : i32, i32
  }
  func.func @transform_2(%arg0: i32) -> (i32, i32) {
    %c0_i32 = arith.constant 0 : i32
    %c0_i32_0 = arith.constant 0 : i32
    %c0_i32_1 = arith.constant 0 : i32
    return %c0_i32, %c0_i32_0 : i32, i32
  }
  func.func @transform_3(%arg0: i32) -> (i32, i32) {
    %c0_i32 = arith.constant 0 : i32
    %c0_i32_0 = arith.constant 0 : i32
    %c0_i32_1 = arith.constant 0 : i32
    return %c0_i32, %c0_i32_0 : i32, i32
  }
  func.func @transform_4(%arg0: i32) -> (i32, i32) {
    %c0_i32 = arith.constant 0 : i32
    %c0_i32_0 = arith.constant 0 : i32
    %c0_i32_1 = arith.constant 0 : i32
    return %c0_i32, %c0_i32_0 : i32, i32
  }
  func.func @transform_5(%arg0: i32) -> (i32, i32) {
    %c0_i32 = arith.constant 0 : i32
    %c0_i32_0 = arith.constant 0 : i32
    %c0_i32_1 = arith.constant 0 : i32
    return %c0_i32, %c0_i32_0 : i32, i32
  }
  func.func @transform_6(%arg0: i32) -> (i32, i32) {
    %c0_i32 = arith.constant 0 : i32
    %c0_i32_0 = arith.constant 0 : i32
    %c0_i32_1 = arith.constant 0 : i32
    return %c0_i32, %c0_i32_0 : i32, i32
  }
  func.func @transform_7(%arg0: i32) -> (i32, i32) {
    %c0_i32 = arith.constant 0 : i32
    %c0_i32_0 = arith.constant 0 : i32
    return %arg0, %c0_i32 : i32, i32
  }
}

</mosaic_0001>

<bundles_post_ra>
// kernel: tpu_custom_call.1
= control target key start
LH: loop header
LB: loop body
LE: loop exit
PB: predicated region body
PF: predicated region fallthrough
CT: control target
= control target key end

     0   :  { %12 = vsyncpa [#allocation3], 0  ;;  %s675_s0 = inlined_call_operand.hbm [shape: f32[8,32], index: 0, kind: input, shape index: {}]   ;;  %s676_s1 = inlined_call_operand.vmem [shape: bf16[32,128], index: 1, kind: input, shape index: {}]   ;;  %s677_s2 = inlined_call_operand.vmem [shape: f32[1,128], index: 2, kind: input, shape index: {}]   ;;  %s678_s3 = inlined_call_operand.vmem [shape: bf16[128,128], index: 3, kind: input, shape index: {}]   ;;  %s679_s4 = inlined_call_operand.vmem [shape: f32[1,128], index: 4, kind: input, shape index: {}]   ;;  %s680_s5 = inlined_call_operand.vmem [shape: bf16[128,16], index: 5, kind: input, shape index: {}]   ;;  %s681_s6 = inlined_call_operand.vmem [shape: f32[1,16], index: 6, kind: input, shape index: {}]   ;;  %s682_s7 = inlined_call_operand.hbm [shape: f32[8,16], index: 7, kind: output, shape index: {}]  }
   0x1   :  { %13 = vsyncpa [#allocation4], 0  ;;  %s520_s24 = smov [#allocation2]   ;;  %s472_s28 = scalar_lea.hbm %s675_s0, 128 }
   0x2   :  { %s20_s25 = sshll.u32 %s520_s24, 4  ;;  %p473_p0 = scmp.ne.s32.totalorder %s675_s0, %s472_s28  ;;  %s21_s25 = int_to_ptr.vmem [resolvable:$true] %s20_s25 }
   0x3   :  { %p476_p1 = scmp.lt.u32.totalorder %s472_s28, %s675_s0 }
   0x5   :  { %p478_p2 = pnand %p476_p1, %p473_p0 }
   0x7   :  { %481 = shalt.err (!%p478_p2)
}
   0x8   :  { %s482_s10 = scalar_lea.vmem %s21_s25, 128  ;;  %p487_p4 = scmp.lt.s32.totalorder %s21_s25, %s21_s25 }
   0x9   :  { %p483_p3 = scmp.ne.s32.totalorder %s21_s25, %s482_s10  ;;  %p488_p5 = scmp.lt.s32.totalorder %s482_s10, %s482_s10 }
   0xb   :  { %p489_p6 = por %p488_p5, %p487_p4 }
   0xd   :  { %p490_p7 = pnand %p489_p6, %p483_p3 }
   0xf   :  { %493 = shalt.err (!%p490_p7)
}
  0x10   :  { %23 = dma.hbm_to_vmem [thread:$0]  %s675_s0, 128, %s21_s25, [#allocation3]  }
  0x11   :  { %516 = dma.done.wait [#allocation3], 128  }
  0x12   :  { %517 = vsyncadd [#allocation3], 4294967168  ;;  %v521_v0 = vmov 0.0   ;;  %vm522_vm0 = vmmov 0   ;;  %v452_v1 = vld [vmem:[%s676_s1] sm:$0xff]   ;;  %v453_v2 = vld [vmem:[%s676_s1 + $0x8] sm:$0xff]  }
  0x13   :  { %400 = vmatprep.subr.bf16.mxu0 %v521_v0  ;;  %404 = vmatprep.mubr.msk.bf16.mxu0 %vm522_vm0, %v521_v0  ;;  %v40_v3 = vld [vmem:[#allocation2] sm:$0xff]  ;;  %v455_v6 = vld [vmem:[%s678_s3 + $0x8] sm:$0xff]   ;;  %vm65_vm1 = vcmask 261120   ;;  %v456_v7 = vld [vmem:[%s678_s3 + $0x10] sm:$0xff]   ;;  %vm340_vm4 = vcmask 130048  }
  0x14   :  { %408 = vmatprep.subr.bf16.mxu1 %v521_v0  ;;  %424 = vmatprep.mubr.msk.bf16.mxu1 %vm522_vm0, %v521_v0  ;;  %v454_v4 = vld [vmem:[%s678_s3] sm:$0xff]   ;;  %v41_v5 = vpack.c.bf16 %v40_v3, %v40_v3  ;;  %v457_v8 = vld [vmem:[%s678_s3 + $0x18] sm:$0xff]   ;;  %v459_v10 = vld [vmem:[%s678_s3 + $0x28] sm:$0xff]  }
  0x15   :  { %401 = vmatpush3.bf16.msra.mxu0 %v452_v1  ;;  %409 = vmatpush3.bf16.msra.mxu1 %v454_v4  ;;  %v458_v9 = vld [vmem:[%s678_s3 + $0x20] sm:$0xff]   ;;  %v460_v11 = vld [vmem:[%s678_s3 + $0x30] sm:$0xff]   ;;  %v461_v12 = vld [vmem:[%s678_s3 + $0x38] sm:$0xff]  }
  0x16   :  { %402 = vmatprep.subr.bf16.mxu0 %v521_v0  ;;  %410 = vmatprep.subr.bf16.mxu1 %v521_v0  ;;  %v462_v13 = vld [vmem:[%s680_s5] sm:$0xff]   ;;  %v463_v14 = vld [vmem:[%s680_s5 + $0x8] sm:$0xff]   ;;  %v464_v15 = vld [vmem:[%s680_s5 + $0x10] sm:$0xff]  }
  0x17   :  { %v465_v16 = vld [vmem:[%s680_s5 + $0x18] sm:$0xff]   ;;  %v466_v17 = vld [vmem:[%s680_s5 + $0x20] sm:$0xff]   ;;  %v467_v18 = vld [vmem:[%s680_s5 + $0x28] sm:$0xff]  }
  0x18   :  { %v357_v19 = vld [vmem:[%s677_s2] ss:$0 sm:$0xff]  ;;  %v468_v28 = vld [vmem:[%s680_s5 + $0x30] sm:$0xff]   ;;  %v469_v29 = vld [vmem:[%s680_s5 + $0x38] sm:$0xff]  }
  0x19   :  { %403 = vmatpush3.bf16.msra.mxu0 %v453_v2  ;;  %411 = vmatpush3.bf16.msra.mxu1 %v455_v6  ;;  %v361_v30 = vld [vmem:[%s679_s4] ss:$0 sm:$0xff]  ;;  %s523_s4 = smov [#allocation5]  }
  0x1a   :  { %428 = vmatprep.subr.bf16.mxu0 %v521_v0  ;;  %412 = vmatprep.subr.bf16.mxu1 %v521_v0  ;;  %v370_v39 = vld [vmem:[%s681_s6] ss:$0 sm:$0xff]  ;;  %s348_s5 = sshll.u32 %s523_s4, 4  ;;  %s349_s5 = int_to_ptr.vmem [resolvable:$true] %s348_s5 }
  0x1b   :  { %s494_s26 = scalar_lea.vmem %s349_s5, 128  ;;  %p499_p9 = scmp.lt.s32.totalorder %s349_s5, %s349_s5 }
  0x1c   :  { %405 = vmatmul.mubr.msk.bf16.vlgmr.msra.gmra.mrb[0].mxu0 %vm65_vm1, %v41_v5  ;;  %p495_p8 = scmp.ne.s32.totalorder %s349_s5, %s494_s26  ;;  %p500_p10 = scmp.lt.s32.totalorder %s494_s26, %s494_s26 }
  0x1d   :  { %444 = vmatprep.mubr.msk.bf16.mxu0 %vm522_vm0, %v521_v0  ;;  %413 = vmatpush3.bf16.msra.mxu1 %v456_v7 }
  0x1e   :  { %414 = vmatprep.subr.bf16.mxu1 %v521_v0  ;;  %429 = vmatpush3.bf16.msra.mxu0 %v462_v13  ;;  %p501_p11 = por %p500_p10, %p499_p9 }
  0x1f   :  { %430 = vmatprep.subr.bf16.mxu0 %v521_v0 }
  0x20   :  { %p502_p12 = pnand %p501_p11, %p495_p8 }
  0x21   :  { %415 = vmatpush3.bf16.msra.mxu1 %v457_v8 }
  0x22   :  { %416 = vmatprep.subr.bf16.mxu1 %v521_v0  ;;  %431 = vmatpush3.bf16.msra.mxu0 %v463_v14 }
  0x23   :  { %432 = vmatprep.subr.bf16.mxu0 %v521_v0 }
  0x25   :  { %417 = vmatpush3.bf16.msra.mxu1 %v458_v9 }
  0x26   :  { %418 = vmatprep.subr.bf16.mxu1 %v521_v0  ;;  %433 = vmatpush3.bf16.msra.mxu0 %v464_v15 }
  0x27   :  { %434 = vmatprep.subr.bf16.mxu0 %v521_v0 }
  0x29   :  { %419 = vmatpush3.bf16.msra.mxu1 %v459_v10 }
  0x2a   :  { %420 = vmatprep.subr.bf16.mxu1 %v521_v0  ;;  %435 = vmatpush3.bf16.msra.mxu0 %v465_v16 }
  0x2b   :  { %436 = vmatprep.subr.bf16.mxu0 %v521_v0 }
  0x2d   :  { %421 = vmatpush3.bf16.msra.mxu1 %v460_v11 }
  0x2e   :  { %422 = vmatprep.subr.bf16.mxu1 %v521_v0  ;;  %437 = vmatpush3.bf16.msra.mxu0 %v466_v17 }
  0x2f   :  { %438 = vmatprep.subr.bf16.mxu0 %v521_v0 }
  0x31   :  { %423 = vmatpush3.bf16.msra.mxu1 %v461_v12 }
  0x32   :  { %439 = vmatpush3.bf16.msra.mxu0 %v467_v18 }
  0x33   :  { %440 = vmatprep.subr.bf16.mxu0 %v521_v0 }
  0x36   :  { %441 = vmatpush3.bf16.msra.mxu0 %v468_v28 }
  0x37   :  { %442 = vmatprep.subr.bf16.mxu0 %v521_v0 }
  0x3a   :  { %443 = vmatpush3.bf16.msra.mxu0 %v469_v29 }
  0xef   :  { %v103_v20 = vpop.f32.mrb[0].mxu0 }
  0xf0   :  { %v104_v21 = vadd.f32 %v357_v19, %v103_v20  ;;  %v406_v22 = vpop.f32.mrb[1].mxu0 }
  0xf1   :  { %v106_v23 = vpop.f32.mrb[2].mxu0 }
  0xf2   :  { %vm109_vm2 = vcmp.ge.f32.partialorder %v104_v21, 0.0  ;;  %v110_v24 = vmul.f32 0.1, %v104_v21  ;;  %v407_v25 = vpop.f32.mrb[3].mxu0 }
  0xf4   :  { %v111_v26 = vsel %vm109_vm2, %v104_v21, %v110_v24 }
  0xf5   :  { %v112_v27 = vpack.c.bf16 %v111_v26, %v111_v26 }
  0xf7   :  { %425 = vmatmul.mubr.bf16.vlgmr.msra.gmra.mrb[0].mxu1 %v112_v27 }
 0x1ca   :  { %v218_v31 = vpop.f32.mrb[0].mxu1 }
 0x1cb   :  { %v219_v32 = vadd.f32 %v361_v30, %v218_v31  ;;  %v426_v33 = vpop.f32.mrb[1].mxu1 }
 0x1cc   :  { %v221_v34 = vpop.f32.mrb[2].mxu1 }
 0x1cd   :  { %vm224_vm3 = vcmp.ge.f32.partialorder %v219_v32, 0.0  ;;  %v225_v35 = vmul.f32 0.1, %v219_v32  ;;  %v427_v36 = vpop.f32.mrb[3].mxu1 }
 0x1cf   :  { %v226_v37 = vsel %vm224_vm3, %v219_v32, %v225_v35 }
 0x1d0   :  { %v227_v38 = vpack.c.bf16 %v226_v37, %v226_v37 }
 0x1d2   :  { %445 = vmatmul.mubr.bf16.vlgmr.msra.gmra.mrb[4].mxu0 %v227_v38 }
 0x2a5   :  { %v333_v40 = vpop.f32.mrb[4].mxu0 }
 0x2a6   :  { %v334_v41 = vadd.f32 %v370_v39, %v333_v40  ;;  %v446_v42 = vpop.f32.mrb[5].mxu0 }
 0x2a7   :  { %v336_v43 = vpop.f32.mrb[6].mxu0 }
 0x2a8   :  { %470 = vtanh.f32 %v334_v41  ;;  %v447_v44 = vpop.f32.mrb[7].mxu0 }
 0x2b2   :  { %v471_v45 = vpop.eup %470 }
 0x2b3   :  { %341 = vst.msk [vmem:[#allocation5] sm:$0xff] %vm340_vm4, %v471_v45 }
 0x2b4   :  { %505 = shalt.err (!%p502_p12)
}
 0x2b5   :  { %s506_s28 = scalar_lea.hbm %s682_s7, 128 }
 0x2b6   :  { %p507_p13 = scmp.ne.s32.totalorder %s682_s7, %s506_s28  ;;  %p510_p0 = scmp.lt.u32.totalorder %s506_s28, %s682_s7 }
 0x2b8   :  { %p512_p1 = pnand %p510_p0, %p507_p13 }
 0x2ba   :  { %515 = shalt.err (!%p512_p1)
}
 0x2bb   :  { %351 = dma.vmem_to_hbm [thread:$0]  %s349_s5, 128, %s682_s7, [#allocation4]  }
 0x2bc   :  { %518 = dma.done.wait [#allocation4], 128  }
 0x2bd   :  { %519 = vsyncadd [#allocation4], 4294967168 }
 0x2be   :  { %355 = vsyncpa [#allocation3], 1 }
 0x2bf   :  { %356 = vsyncpa [#allocation4], 1 }

</bundles_post_ra>
